<compile_context>
chip_gen: v7x
topology: tpu7x:2x2x1
jax: 0.10.0
libtpu: 0.0.40
codegen_flags: <defaults>
</compile_context>

<pallas_src>
import jax
import jax.numpy as jnp
from jax.experimental import pallas as pl
from jax.experimental.pallas import tpu as pltpu

VMEM_SPEC = pl.BlockSpec(memory_space=pltpu.MemorySpace.VMEM)


# ------------------------------ fused kernel -------------------------------- #

def _make_resblock_kernel(stride, has_proj):
    """Build the fused ResidualBlock kernel for a static (stride, has_proj)."""

    def kernel(*refs):
        # ---- unpack refs (layout depends on static config) ----
        if stride == 1:
            xp_ref = refs[0]                 # (B, L+2, Cin) padded input, f32
            w_refs = refs[1:]
        else:
            e_ref, od_ref = refs[0], refs[1]  # even / odd padded rows, f32
            w_refs = refs[2:]
        w1_ref, s1_ref, b1_ref, w2_ref, s2_ref, b2_ref = w_refs[:6]
        if has_proj:
            wsc_ref, ssc_ref, bsc_ref, o_ref, h_ref = w_refs[6:]
        else:
            o_ref, h_ref = w_refs[6:]

        B, Lo, Cout = o_ref.shape
        M = B * Lo

        # ---- conv1 input taps (bf16 operands), in-kernel im2col ----
        if stride == 1:
            xbf = xp_ref[...].astype(jnp.bfloat16)            # (B, L+2, Cin)
            taps = [xbf[:, k:k + Lo, :] for k in range(3)]
            sc_f32 = xp_ref[:, 1:Lo + 1, :]                   # identity pre-image
        else:
            ebf = e_ref[...].astype(jnp.bfloat16)             # even padded rows
            obf = od_ref[...].astype(jnp.bfloat16)            # odd padded rows
            # out[i] uses padded rows 2i, 2i+1, 2i+2  ->  E[i], O[i], E[i+1]
            taps = [ebf[:, 0:Lo, :], obf[:, 0:Lo, :], ebf[:, 1:Lo + 1, :]]
            sc_f32 = od_ref[:, 0:Lo, :]                       # x[2i] = O[i]
        cin = taps[0].shape[-1]
        taps2 = [t.reshape(M, cin) for t in taps]             # merge B*L_out

        # ---- conv1 (3 accumulated MXU matmuls) + bn1 + relu ----
        acc1 = jnp.dot(taps2[0], w1_ref[0], preferred_element_type=jnp.float32)
        for k in range(1, 3):
            acc1 = acc1 + jnp.dot(taps2[k], w1_ref[k],
                                  preferred_element_type=jnp.float32)
        h1 = jnp.maximum(acc1 * s1_ref[...] + b1_ref[...], 0.0)   # (M, Cout) f32

        # ---- stage intermediate in zero-padded VMEM scratch (bf16) ----
        h_ref[...] = jnp.zeros_like(h_ref)
        h_ref[:, 1:Lo + 1, :] = h1.reshape(B, Lo, Cout).astype(h_ref.dtype)

        # ---- conv2 + bn2 ----
        hbf = h_ref[...]                                       # (B, Lo+2, Cout)
        acc2 = jnp.dot(hbf[:, 0:Lo, :].reshape(M, Cout), w2_ref[0],
                       preferred_element_type=jnp.float32)
        for k in range(1, 3):
            acc2 = acc2 + jnp.dot(hbf[:, k:k + Lo, :].reshape(M, Cout), w2_ref[k],
                                  preferred_element_type=jnp.float32)
        y = acc2 * s2_ref[...] + b2_ref[...]

        # ---- shortcut ----
        if has_proj:
            sc = jnp.dot(taps2[1], wsc_ref[...],        # taps[1] == shortcut input
                         preferred_element_type=jnp.float32)
            sc = sc * ssc_ref[...] + bsc_ref[...]
        else:
            sc = sc_f32.reshape(M, Cout)                # identity (Cin == Cout)

        # ---- residual add + relu ----
        o_ref[...] = jnp.maximum(y + sc, 0.0).reshape(B, Lo, Cout)

    return kernel


# ------------------------------ public wrapper ------------------------------ #

def residual_block_forward(x_ncl, params, *, stride):
    """x_ncl: (B, C_in, L) PyTorch layout. Returns (B, C_out, L_out)."""
    x = jnp.transpose(x_ncl, (0, 2, 1)).astype(jnp.float32)   # -> (B, L, Cin)
    B, L, _ = x.shape
    Cout = params["s1"].shape[-1]
    has_proj = "wsc" in params
    Lo = (L + 2 - 3) // stride + 1

    xp = jnp.pad(x, ((0, 0), (1, 1), (0, 0)))                 # zero pad, p=1
    if stride == 1:
        act_inputs = [xp]
    else:
        # deinterleave padded rows (same bytes as xp; all in-kernel slices static)
        act_inputs = [xp[:, 0::2, :], xp[:, 1::2, :]]

    inputs = act_inputs + [params["w1"], params["s1"], params["b1"],
                           params["w2"], params["s2"], params["b2"]]
    if has_proj:
        inputs += [params["wsc"], params["ssc"], params["bsc"]]

    out = pl.pallas_call(
        _make_resblock_kernel(stride=stride, has_proj=has_proj),
        out_shape=jax.ShapeDtypeStruct((B, Lo, Cout), jnp.float32),
        in_specs=[VMEM_SPEC] * len(inputs),
        out_specs=VMEM_SPEC,
        scratch_shapes=[pltpu.VMEM((B, Lo + 2, Cout), jnp.bfloat16)],
    )(*inputs)
    return jnp.transpose(out, (0, 2, 1))                      # back to (B, C, L)


# --------------------------- parameters / reference ------------------------- #

def init_raw_block_params(key, in_channels, out_channels, stride):
    """Raw PyTorch-layout params (f32), eval-mode BN stats."""
    ks = jax.random.split(key, 6)

    def conv_w(k, cout, cin, ksz):
        fan_in = float(cin * ksz)
        return jax.random.normal(k, (cout, cin, ksz), jnp.float32) / jnp.sqrt(fan_in)

    def bn(k, c):
        k1, k2, k3, k4 = jax.random.split(k, 4)
        gamma = 1.0 + 0.1 * jax.random.normal(k1, (c,), jnp.float32)
        beta = 0.1 * jax.random.normal(k2, (c,), jnp.float32)
        mean = 0.1 * jax.random.normal(k3, (c,), jnp.float32)
        var = jax.random.uniform(k4, (c,), jnp.float32, minval=0.5, maxval=1.5)
        return (gamma, beta, mean, var)

    raw = {
        "stride": stride,
        "w1": conv_w(ks[0], out_channels, in_channels, 3),
        "bn1": bn(ks[1], out_channels),
        "w2": conv_w(ks[2], out_channels, out_channels, 3),
        "bn2": bn(ks[3], out_channels),
    }
    if stride != 1 or in_channels != out_channels:
        raw["wsc"] = conv_w(ks[4], out_channels, in_channels, 1)
        raw["bnsc"] = bn(ks[5], out_channels)
    return raw


def prepare_block_params(raw, eps=1e-5):
    """One-time prep: fold BN into scale/shift, transpose weights, cast bf16."""
    def fold(bn):
        gamma, beta, mean, var = bn
        scale = gamma / jnp.sqrt(var + eps)
        shift = beta - mean * scale
        return (scale.reshape(1, -1).astype(jnp.float32),
                shift.reshape(1, -1).astype(jnp.float32))

    p = {
        "w1": jnp.transpose(raw["w1"], (2, 1, 0)).astype(jnp.bfloat16),  # (K,Cin,Cout)
        "w2": jnp.transpose(raw["w2"], (2, 1, 0)).astype(jnp.bfloat16),
    }
    p["s1"], p["b1"] = fold(raw["bn1"])
    p["s2"], p["b2"] = fold(raw["bn2"])
    if "wsc" in raw:
        p["wsc"] = jnp.transpose(raw["wsc"][:, :, 0], (1, 0)).astype(jnp.bfloat16)
        p["ssc"], p["bsc"] = fold(raw["bnsc"])
    return p


def _conv1d_ref(x, w, stride, padding):
    return jax.lax.conv_general_dilated(
        x, w, window_strides=(stride,), padding=[(padding, padding)],
        dimension_numbers=("NCH", "OIH", "NCH"))


def _bn_ref(x, bn, eps=1e-5):
    gamma, beta, mean, var = bn
    inv = gamma / jnp.sqrt(var + eps)
    return (x - mean[None, :, None]) * inv[None, :, None] + beta[None, :, None]


def residual_block_reference(x, raw):
    """Pure-JAX f32 reference mirroring the PyTorch forward (eval-mode BN)."""
    s = raw["stride"]
    out = jax.nn.relu(_bn_ref(_conv1d_ref(x, raw["w1"], s, 1), raw["bn1"]))
    out = _bn_ref(_conv1d_ref(out, raw["w2"], 1, 1), raw["bn2"])
    if "wsc" in raw:
        sc = _bn_ref(_conv1d_ref(x, raw["wsc"], s, 0), raw["bnsc"])
    else:
        sc = x
    return jax.nn.relu(out + sc)


# ----------------------------------- main ----------------------------------- #

if __name__ == "__main__":
    key = jax.random.PRNGKey(0)
    fwd = jax.jit(residual_block_forward, static_argnames=("stride",))

    B, L = 2, 32
    cases = [
        (32, 32, 1),   # identity shortcut
        (32, 64, 2),   # projection (1x1 conv + bn) shortcut, stride 2
    ]
    for i, (cin, cout, stride) in enumerate(cases):
        kp, kx, key = jax.random.split(key, 3)
        raw = init_raw_block_params(kp, cin, cout, stride)
        params = prepare_block_params(raw)
        x = jax.random.normal(kx, (B, cin, L), jnp.float32)   # PyTorch NCL layout

        out = jax.block_until_ready(fwd(x, params, stride=stride))

        Lo = (L + 2 - 3) // stride + 1
        assert out.shape == (B, cout, Lo), out.shape
        assert bool(jnp.all(jnp.isfinite(out)))

        ref = residual_block_reference(x, raw)
        err = float(jnp.max(jnp.abs(out - ref)))
        # bf16 matmul operands (f32 accumulation) -> small numeric drift vs f32 ref
        assert err < 0.25, f"case {i}: max abs err {err}"

    print("KERNEL_OK")
</pallas_src>

<mosaic_0001>
module attributes {stable_mosaic.version = 11 : i64} {
  func.func @kernel(%arg0: memref<2x34x32xf32, #tpu.memory_space<vmem>>, %arg1: memref<3x32x32xbf16, #tpu.memory_space<vmem>>, %arg2: memref<1x32xf32, #tpu.memory_space<vmem>>, %arg3: memref<1x32xf32, #tpu.memory_space<vmem>>, %arg4: memref<3x32x32xbf16, #tpu.memory_space<vmem>>, %arg5: memref<1x32xf32, #tpu.memory_space<vmem>>, %arg6: memref<1x32xf32, #tpu.memory_space<vmem>>, %arg7: memref<2x32x32xf32, #tpu.memory_space<vmem>>, %arg8: memref<2x34x32xbf16, #tpu.memory_space<vmem>>) attributes {dimension_semantics = [], scalar_prefetch = 0 : i64, scratch_operands = 1 : i64, tpu.core_type = #tpu.core_type<tc>} {
    %c0 = arith.constant 0 : index
    %c0_0 = arith.constant 0 : index
    %c0_1 = arith.constant 0 : index
    %0 = vector.load %arg0[%c0, %c0_0, %c0_1] : memref<2x34x32xf32, #tpu.memory_space<vmem>>, vector<2x34x32xf32>
    %1 = arith.truncf %0 : vector<2x34x32xf32> to vector<2x34x32xbf16>
    %2 = vector.extract_strided_slice %1 {offsets = [0, 0, 0], sizes = [2, 32, 32], strides = [1, 1, 1]} : vector<2x34x32xbf16> to vector<2x32x32xbf16>
    %3 = vector.extract_strided_slice %1 {offsets = [0, 1, 0], sizes = [2, 32, 32], strides = [1, 1, 1]} : vector<2x34x32xbf16> to vector<2x32x32xbf16>
    %4 = vector.extract_strided_slice %1 {offsets = [0, 2, 0], sizes = [2, 32, 32], strides = [1, 1, 1]} : vector<2x34x32xbf16> to vector<2x32x32xbf16>
    %c0_2 = arith.constant 0 : index
    %c1 = arith.constant 1 : index
    %c0_3 = arith.constant 0 : index
    %5 = vector.load %arg0[%c0_2, %c1, %c0_3] : memref<2x34x32xf32, #tpu.memory_space<vmem>>, vector<2x32x32xf32>
    %6 = vector.shape_cast %2 : vector<2x32x32xbf16> to vector<64x32xbf16>
    %7 = vector.shape_cast %3 : vector<2x32x32xbf16> to vector<64x32xbf16>
    %8 = vector.shape_cast %4 : vector<2x32x32xbf16> to vector<64x32xbf16>
    %c0_4 = arith.constant 0 : index
    %c0_5 = arith.constant 0 : index
    %c0_6 = arith.constant 0 : index
    %9 = vector.load %arg1[%c0_4, %c0_5, %c0_6] : memref<3x32x32xbf16, #tpu.memory_space<vmem>>, vector<1x32x32xbf16>
    %10 = vector.shape_cast %9 : vector<1x32x32xbf16> to vector<32x32xbf16>
    %cst = arith.constant dense<0.000000e+00> : vector<64x32xf32>
    %11 = tpu.matmul %6, %10, %cst {dimension_numbers = #tpu.dot_dimension_numbers<[1], [0], [0], [1], [0, 0, 1, 1], [], []>} : vector<64x32xbf16>, vector<32x32xbf16>, vector<64x32xf32> -> vector<64x32xf32>
    %c1_7 = arith.constant 1 : index
    %c0_8 = arith.constant 0 : index
    %c0_9 = arith.constant 0 : index
    %12 = vector.load %arg1[%c1_7, %c0_8, %c0_9] : memref<3x32x32xbf16, #tpu.memory_space<vmem>>, vector<1x32x32xbf16>
    %13 = vector.shape_cast %12 : vector<1x32x32xbf16> to vector<32x32xbf16>
    %cst_10 = arith.constant dense<0.000000e+00> : vector<64x32xf32>
    %14 = tpu.matmul %7, %13, %cst_10 {dimension_numbers = #tpu.dot_dimension_numbers<[1], [0], [0], [1], [0, 0, 1, 1], [], []>} : vector<64x32xbf16>, vector<32x32xbf16>, vector<64x32xf32> -> vector<64x32xf32>
    %15 = arith.addf %11, %14 : vector<64x32xf32>
    %c2 = arith.constant 2 : index
    %c0_11 = arith.constant 0 : index
    %c0_12 = arith.constant 0 : index
    %16 = vector.load %arg1[%c2, %c0_11, %c0_12] : memref<3x32x32xbf16, #tpu.memory_space<vmem>>, vector<1x32x32xbf16>
    %17 = vector.shape_cast %16 : vector<1x32x32xbf16> to vector<32x32xbf16>
    %cst_13 = arith.constant dense<0.000000e+00> : vector<64x32xf32>
    %18 = tpu.matmul %8, %17, %cst_13 {dimension_numbers = #tpu.dot_dimension_numbers<[1], [0], [0], [1], [0, 0, 1, 1], [], []>} : vector<64x32xbf16>, vector<32x32xbf16>, vector<64x32xf32> -> vector<64x32xf32>
    %19 = arith.addf %15, %18 : vector<64x32xf32>
    %c0_14 = arith.constant 0 : index
    %c0_15 = arith.constant 0 : index
    %20 = vector.load %arg2[%c0_14, %c0_15] : memref<1x32xf32, #tpu.memory_space<vmem>>, vector<1x32xf32>
    %21 = vector.broadcast %20 : vector<1x32xf32> to vector<64x32xf32>
    %22 = arith.mulf %19, %21 : vector<64x32xf32>
    %c0_16 = arith.constant 0 : index
    %c0_17 = arith.constant 0 : index
    %23 = vector.load %arg3[%c0_16, %c0_17] : memref<1x32xf32, #tpu.memory_space<vmem>>, vector<1x32xf32>
    %24 = vector.broadcast %23 : vector<1x32xf32> to vector<64x32xf32>
    %25 = arith.addf %22, %24 : vector<64x32xf32>
    %cst_18 = arith.constant 0.000000e+00 : f32
    %26 = vector.broadcast %cst_18 : f32 to vector<64x32xf32>
    %27 = arith.maximumf %25, %26 : vector<64x32xf32>
    %cst_19 = arith.constant 0.000000e+00 : bf16
    %28 = vector.broadcast %cst_19 : bf16 to vector<2x34x32xbf16>
    %c0_20 = arith.constant 0 : index
    %c0_21 = arith.constant 0 : index
    %c0_22 = arith.constant 0 : index
    %29 = vector.load %arg8[%c0_20, %c0_21, %c0_22] : memref<2x34x32xbf16, #tpu.memory_space<vmem>>, vector<2x34x32xbf16>
    tpu.vector_store %arg8[%c0_20, %c0_21, %c0_22], %28 {strides = array<i32>} : memref<2x34x32xbf16, #tpu.memory_space<vmem>>, vector<2x34x32xbf16>,
    %30 = vector.shape_cast %27 : vector<64x32xf32> to vector<2x32x32xf32>
    %31 = arith.truncf %30 : vector<2x32x32xf32> to vector<2x32x32xbf16>
    %c0_23 = arith.constant 0 : index
    %c1_24 = arith.constant 1 : index
    %c0_25 = arith.constant 0 : index
    %32 = vector.load %arg8[%c0_23, %c1_24, %c0_25] : memref<2x34x32xbf16, #tpu.memory_space<vmem>>, vector<2x32x32xbf16>
    tpu.vector_store %arg8[%c0_23, %c1_24, %c0_25], %31 {strides = array<i32>} : memref<2x34x32xbf16, #tpu.memory_space<vmem>>, vector<2x32x32xbf16>,
    %c0_26 = arith.constant 0 : index
    %c0_27 = arith.constant 0 : index
    %c0_28 = arith.constant 0 : index
    %33 = vector.load %arg8[%c0_26, %c0_27, %c0_28] : memref<2x34x32xbf16, #tpu.memory_space<vmem>>, vector<2x34x32xbf16>
    %34 = vector.extract_strided_slice %33 {offsets = [0, 0, 0], sizes = [2, 32, 32], strides = [1, 1, 1]} : vector<2x34x32xbf16> to vector<2x32x32xbf16>
    %35 = vector.shape_cast %34 : vector<2x32x32xbf16> to vector<64x32xbf16>
    %c0_29 = arith.constant 0 : index
    %c0_30 = arith.constant 0 : index
    %c0_31 = arith.constant 0 : index
    %36 = vector.load %arg4[%c0_29, %c0_30, %c0_31] : memref<3x32x32xbf16, #tpu.memory_space<vmem>>, vector<1x32x32xbf16>
    %37 = vector.shape_cast %36 : vector<1x32x32xbf16> to vector<32x32xbf16>
    %cst_32 = arith.constant dense<0.000000e+00> : vector<64x32xf32>
    %38 = tpu.matmul %35, %37, %cst_32 {dimension_numbers = #tpu.dot_dimension_numbers<[1], [0], [0], [1], [0, 0, 1, 1], [], []>} : vector<64x32xbf16>, vector<32x32xbf16>, vector<64x32xf32> -> vector<64x32xf32>
    %39 = vector.extract_strided_slice %33 {offsets = [0, 1, 0], sizes = [2, 32, 32], strides = [1, 1, 1]} : vector<2x34x32xbf16> to vector<2x32x32xbf16>
    %40 = vector.shape_cast %39 : vector<2x32x32xbf16> to vector<64x32xbf16>
    %c1_33 = arith.constant 1 : index
    %c0_34 = arith.constant 0 : index
    %c0_35 = arith.constant 0 : index
    %41 = vector.load %arg4[%c1_33, %c0_34, %c0_35] : memref<3x32x32xbf16, #tpu.memory_space<vmem>>, vector<1x32x32xbf16>
    %42 = vector.shape_cast %41 : vector<1x32x32xbf16> to vector<32x32xbf16>
    %cst_36 = arith.constant dense<0.000000e+00> : vector<64x32xf32>
    %43 = tpu.matmul %40, %42, %cst_36 {dimension_numbers = #tpu.dot_dimension_numbers<[1], [0], [0], [1], [0, 0, 1, 1], [], []>} : vector<64x32xbf16>, vector<32x32xbf16>, vector<64x32xf32> -> vector<64x32xf32>
    %44 = arith.addf %38, %43 : vector<64x32xf32>
    %45 = vector.extract_strided_slice %33 {offsets = [0, 2, 0], sizes = [2, 32, 32], strides = [1, 1, 1]} : vector<2x34x32xbf16> to vector<2x32x32xbf16>
    %46 = vector.shape_cast %45 : vector<2x32x32xbf16> to vector<64x32xbf16>
    %c2_37 = arith.constant 2 : index
    %c0_38 = arith.constant 0 : index
    %c0_39 = arith.constant 0 : index
    %47 = vector.load %arg4[%c2_37, %c0_38, %c0_39] : memref<3x32x32xbf16, #tpu.memory_space<vmem>>, vector<1x32x32xbf16>
    %48 = vector.shape_cast %47 : vector<1x32x32xbf16> to vector<32x32xbf16>
    %cst_40 = arith.constant dense<0.000000e+00> : vector<64x32xf32>
    %49 = tpu.matmul %46, %48, %cst_40 {dimension_numbers = #tpu.dot_dimension_numbers<[1], [0], [0], [1], [0, 0, 1, 1], [], []>} : vector<64x32xbf16>, vector<32x32xbf16>, vector<64x32xf32> -> vector<64x32xf32>
    %50 = arith.addf %44, %49 : vector<64x32xf32>
    %c0_41 = arith.constant 0 : index
    %c0_42 = arith.constant 0 : index
    %51 = vector.load %arg5[%c0_41, %c0_42] : memref<1x32xf32, #tpu.memory_space<vmem>>, vector<1x32xf32>
    %52 = vector.broadcast %51 : vector<1x32xf32> to vector<64x32xf32>
    %53 = arith.mulf %50, %52 : vector<64x32xf32>
    %c0_43 = arith.constant 0 : index
    %c0_44 = arith.constant 0 : index
    %54 = vector.load %arg6[%c0_43, %c0_44] : memref<1x32xf32, #tpu.memory_space<vmem>>, vector<1x32xf32>
    %55 = vector.broadcast %54 : vector<1x32xf32> to vector<64x32xf32>
    %56 = arith.addf %53, %55 : vector<64x32xf32>
    %57 = vector.shape_cast %5 : vector<2x32x32xf32> to vector<64x32xf32>
    %58 = arith.addf %56, %57 : vector<64x32xf32>
    %cst_45 = arith.constant 0.000000e+00 : f32
    %59 = vector.broadcast %cst_45 : f32 to vector<64x32xf32>
    %60 = arith.maximumf %58, %59 : vector<64x32xf32>
    %61 = vector.shape_cast %60 : vector<64x32xf32> to vector<2x32x32xf32>
    %c0_46 = arith.constant 0 : index
    %c0_47 = arith.constant 0 : index
    %c0_48 = arith.constant 0 : index
    %62 = vector.load %arg7[%c0_46, %c0_47, %c0_48] : memref<2x32x32xf32, #tpu.memory_space<vmem>>, vector<2x32x32xf32>
    tpu.vector_store %arg7[%c0_46, %c0_47, %c0_48], %61 {strides = array<i32>} : memref<2x32x32xf32, #tpu.memory_space<vmem>>, vector<2x32x32xf32>,
    return
  }
}

</mosaic_0001>

<bundles_post_ra>
// kernel: residual_block_forward.1
= control target key start
LH: loop header
LB: loop body
LE: loop exit
PB: predicated region body
PF: predicated region fallthrough
CT: control target
= control target key end

     0   :  { %vm51_vm0 = vsmask.f32 7424  ;;  %vm130_vm1 = vcmask 261120   ;;  %vm98_vm2 = vcmask 1046528   ;;  %vm433_vm3 = vcmask 257024   ;;  %s1736_s1 = inlined_call_operand.vmem [shape: bf16[3,32,32], index: 1, kind: input, shape index: {}]   ;;  %s1737_s0 = inlined_call_operand.vmem [shape: f32[2,34,32], index: 0, kind: input, shape index: {}]   ;;  %s1738_s4 = inlined_call_operand.vmem [shape: bf16[3,32,32], index: 4, kind: input, shape index: {}]   ;;  %s1739_s2 = inlined_call_operand.vmem [shape: f32[1,32], index: 2, kind: input, shape index: {}]   ;;  %s1740_s3 = inlined_call_operand.vmem [shape: f32[1,32], index: 3, kind: input, shape index: {}]   ;;  %s1741_s5 = inlined_call_operand.vmem [shape: f32[1,32], index: 5, kind: input, shape index: {}]   ;;  %s1742_s6 = inlined_call_operand.vmem [shape: f32[1,32], index: 6, kind: input, shape index: {}]   ;;  %s1743_s7 = inlined_call_operand.vmem [shape: f32[2,32,32], index: 7, kind: output, shape index: {}]  }
   0x1   :  { %v1325_v0 = vld [vmem:[%s1736_s1 + $0x10] sm:$0xff]   ;;  %v1326_v1 = vld [vmem:[%s1736_s1 + $0x18] sm:$0xff]   ;;  %v27_v2 = vld [vmem:[%s1737_s0] sm:$0xff]  ;;  %v1341_v56 = vmov 0   ;;  %vm438_vm4 = vcmask 253952   ;;  %vm897_vm14 = vcmask 1042432  }
   0x2   :  { %1220 = vmatprep.subr.bf16.mxu0 %v1325_v0  ;;  %v28_v3 = vld [vmem:[%s1737_s0 + $0x8] sm:$0xff]  ;;  %v29_v4 = vld [vmem:[%s1737_s0 + $0x10] sm:$0xff]  ;;  %v30_v5 = vld [vmem:[%s1737_s0 + $0x18] sm:$0xff]  ;;  %434 = vst.msk [vmem:[#allocation2] sm:$0xf] %vm433_vm3, %v1341_v56  ;;  %vm898_vm15 = vcmask 1046532  }
   0x3   :  { %1221 = vmatpush3.bf16.msra.mxu0 %v1325_v0  ;;  %v1400_v6 = vpack.c.bf16 %v28_v3, %v27_v2  ;;  %v31_v7 = vld [vmem:[%s1737_s0 + $0x20] sm:$0x3]  ;;  %v1405_v8 = vpack.c.bf16 %v30_v5, %v29_v4  ;;  %v32_v11 = vld [vmem:[%s1737_s0 + $0x28] sm:$0xff]  ;;  %v33_v14 = vld [vmem:[%s1737_s0 + $0x30] sm:$0xff]  ;;  %435 = vst.msk [vmem:[#allocation2 + $0x4] sm:$0xf] %vm433_vm3, %v1341_v56 }
   0x4   :  { %1222 = vmatprep.subr.bf16.mxu0 %v1326_v1  ;;  %v1407_v9 = vpack.c.bf16 %v31_v7, %v31_v7  ;;  %v1327_v10 = vld [vmem:[%s1736_s1] sm:$0xff]   ;;  %v34_v15 = vld [vmem:[%s1737_s0 + $0x38] sm:$0xff]  ;;  %v36_v20 = vld [vmem:[%s1737_s0 + $0x48] sm:$0x3]  ;;  %v40_v22 = vpack.c.bf16 %v33_v14, %v32_v11  ;;  %436 = vst.msk [vmem:[#allocation2 + $0x8] sm:$0xf] %vm433_vm3, %v1341_v56 }
   0x5   :  { %v53_v12 = vshrl.u32 %v1400_v6, 16  ;;  %v55_v13 = vshll.u32 %v1400_v6, 16  ;;  %v35_v16 = vld [vmem:[%s1737_s0 + $0x40] sm:$0xff]  ;;  %v60_v17 = vshll.u32 %v1405_v8, 16  ;;  %v64_v18 = vshrl.u32 %v1405_v8, 16  ;;  %v1328_v37 = vld [vmem:[%s1736_s1 + $0x8] sm:$0xff]  }
   0x6   :  { %v68_v19 = vshll.u32 %v1407_v9, 16  ;;  %v41_v23 = vpack.c.bf16 %v35_v16, %v34_v15  ;;  %v42_v24 = vpack.c.bf16 %v36_v20, %v36_v20  ;;  %v73_v28 = vshrl.u32 %v40_v22, 16  ;;  %v1329_v43 = vld [vmem:[%s1736_s1 + $0x20] sm:$0xff]   ;;  %v1330_v45 = vld [vmem:[%s1736_s1 + $0x28] sm:$0xff]   ;;  %437 = vst.msk [vmem:[#allocation2 + $0xc] sm:$0xf] %vm433_vm3, %v1341_v56 }
   0x7   :  { %1223 = vmatpush3.bf16.msra.mxu0 %v1326_v1  ;;  %v57_v21 = vrot.slane %v55_v13, 1  ;;  %v62_v25 = vrot.slane %v60_v17, 1  ;;  %v75_v29 = vshll.u32 %v40_v22, 16  ;;  %v99_v46 = vrot.slane %v1400_v6, 1  ;;  %440 = vst.msk [vmem:[#allocation2 + $0x14] sm:$0xf] %vm433_vm3, %v1341_v56 }
   0x8   :  { %v70_v26 = vrot.slane %v68_v19, 1  ;;  %1232 = vmatprep.subr.bf16.mxu0 %v1327_v10  ;;  %v80_v30 = vshll.u32 %v41_v23, 16  ;;  %v84_v32 = vshrl.u32 %v41_v23, 16  ;;  %v88_v33 = vshll.u32 %v42_v24, 16  ;;  %441 = vst.msk [vmem:[#allocation2 + $0x18] sm:$0xf] %vm433_vm3, %v1341_v56 }
   0x9   :  { %v58_v27 = vor.u32 %v57_v21, %v53_v12  ;;  %v66_v31 = vor.u32 %v64_v18, %v62_v25  ;;  %v77_v35 = vrot.slane %v75_v29, 1  ;;  %v100_v47 = vrot.slane %v1405_v8, 1  ;;  %442 = vst.msk [vmem:[#allocation2 + $0x1c] sm:$0xf] %vm433_vm3, %v1341_v56  ;;  %443 = vst.msk [vmem:[#allocation2 + $0x20] sm:$0xf] %vm433_vm3, %v1341_v56 }
   0xa   :  { %v82_v36 = vrot.slane %v80_v30, 1  ;;  %v90_v41 = vrot.slane %v88_v33, 1  ;;  %v102_v49 = vrot.slane %v1407_v9, 1  ;;  %v104_v50 = vrot.slane %v40_v22, 1  ;;  %439 = vst.msk [vmem:[#allocation2 + $0x10] sm:$0x1] %vm438_vm4, %v1341_v56 }
   0xb   :  { %v63_v34 = vsel %vm51_vm0, %v58_v27, %v62_v25  ;;  %v71_v38 = vsel %vm51_vm0, %v66_v31, %v70_v26  ;;  %v78_v39 = vor.u32 %v77_v35, %v73_v28  ;;  %v101_v48 = vsel %vm98_vm2, %v99_v46, %v100_v47  ;;  %444 = vst.msk [vmem:[#allocation2 + $0x24] sm:$0x1] %vm438_vm4, %v1341_v56  ;;  %v1331_v57 = vld [vmem:[%s1738_s4 + $0x10] sm:$0xff]   ;;  %v1332_v58 = vld [vmem:[%s1738_s4 + $0x18] sm:$0xff]   ;;  %v1481_v59 = vld [vmem:[%s1738_s4] sm:$0xff]  }
   0xc   :  { %1224 = vmatprep.mubr.msk.bf16.mxu0 %vm130_vm1, %v63_v34  ;;  %v86_v40 = vor.u32 %v84_v32, %v82_v36  ;;  %v105_v51 = vrot.slane %v41_v23, 1  ;;  %v103_v52 = vsel %vm98_vm2, %v100_v47, %v102_v49  ;;  %v107_v54 = vrot.slane %v42_v24, 1  ;;  %1256 = vmatprep.subr.bf16.mxu1 %v1331_v57  ;;  %v1487_v60 = vld [vmem:[%s1739_s2] ss:$0 sm:$0xff] }
   0xd   :  { %1225 = vmatmul.mubr.msk.bf16.vlgmr.msra.gmra.mrb[0].mxu0 %vm130_vm1, %v71_v38  ;;  %v83_v42 = vsel %vm51_vm0, %v78_v39, %v82_v36  ;;  %1257 = vmatpush3.bf16.msra.mxu1 %v1331_v57  ;;  %v1492_v62 = vld [vmem:[%s1740_s3] ss:$0 sm:$0xff]  ;;  %vm553_vm5 = vsmask.f32 7938  ;;  %vm469_vm6 = vsmask.f32 256 }
   0xe   :  { %1233 = vmatpush3.bf16.msra.mxu0 %v1327_v10  ;;  %1228 = vmatprep.mubr.msk.bf16.mxu0 %vm130_vm1, %v83_v42  ;;  %v91_v44 = vsel %vm51_vm0, %v86_v40, %v90_v41  ;;  %v106_v53 = vsel %vm98_vm2, %v104_v50, %v105_v51  ;;  %v108_v55 = vsel %vm98_vm2, %v105_v51, %v107_v54  ;;  %vm470_vm7 = vsmask.f32 4368  ;;  %vm1507_vm8 = vmand %vm433_vm3, %vm553_vm5  ;;  %v555_v39 = vld [vmem:[#allocation2] sm:$0xf] }
   0xf   :  { %1234 = vmatprep.subr.bf16.mxu0 %v1328_v37  ;;  %1258 = vmatprep.subr.bf16.mxu1 %v1332_v58  ;;  %vm1514_vm9 = vmor %vm469_vm6, %vm470_vm7  ;;  %vm589_vm11 = vsmask.f32 3328  ;;  %vm590_vm12 = vsmask.f32 7440 }
  0x10   :  { %vm1520_vm10 = vmand %vm438_vm4, %vm469_vm6 }
  0x11   :  { %1259 = vmatpush3.bf16.msra.mxu1 %v1332_v58  ;;  %v563_v46 = vld [vmem:[#allocation2 + $0x10] sm:$0x1]  ;;  %vm1573_vm13 = vmor %vm589_vm11, %vm590_vm12 }
  0x12   :  { %1235 = vmatpush3.bf16.msra.mxu0 %v1328_v37  ;;  %1268 = vmatprep.subr.bf16.mxu1 %v1481_v59  ;;  %vm1639_vm0 = vmor %vm897_vm14, %vm898_vm15 }
  0x13   :  { %1244 = vmatprep.subr.bf16.mxu0 %v1329_v43 }
  0x15   :  { %1229 = vmatmul.mubr.msk.bf16.gmra.mrb[4].mxu0 %vm130_vm1, %v91_v44 }
  0x16   :  { %1236 = vmatprep.mubr.msk.bf16.mxu0 %vm130_vm1, %v1400_v6 }
  0x1d   :  { %1237 = vmatmul.mubr.msk.bf16.vlgmr.msra.gmra.mrb[0].mxu0 %vm130_vm1, %v1405_v8 }
  0x1e   :  { %1245 = vmatpush3.bf16.msra.mxu0 %v1329_v43  ;;  %1240 = vmatprep.mubr.msk.bf16.mxu0 %vm130_vm1, %v40_v22 }
  0x1f   :  { %1246 = vmatprep.subr.bf16.mxu0 %v1330_v45 }
  0x22   :  { %1247 = vmatpush3.bf16.msra.mxu0 %v1330_v45  ;;  %v1340_v45 = vld [vmem:[%s1738_s4 + $0x28] sm:$0xff]  }
  0x25   :  { %1241 = vmatmul.mubr.msk.bf16.gmra.mrb[4].mxu0 %vm130_vm1, %v41_v23 }
  0x26   :  { %1248 = vmatprep.mubr.msk.bf16.mxu0 %vm130_vm1, %v101_v48 }
  0x2d   :  { %1249 = vmatmul.mubr.msk.bf16.vlgmr.msra.gmra.mrb[0].mxu0 %vm130_vm1, %v103_v52 }
  0x2e   :  { %1252 = vmatprep.mubr.msk.bf16.mxu0 %vm130_vm1, %v106_v53 }
  0x35   :  { %1253 = vmatmul.mubr.msk.bf16.gmra.mrb[4].mxu0 %vm130_vm1, %v108_v55 }
 0x100   :  { %v1250_v61 = vpop.f32.mrb[0].mxu0 }
 0x101   :  { %v404_v63 = vmul.f32 %v1250_v61, %v1487_v60  ;;  %v356_v0 = vpop.f32.mrb[1].mxu0 }
 0x102   :  { %v402_v1 = vmul.f32 %v1487_v60, %v356_v0  ;;  %v1251_v2 = vpop.f32.mrb[2].mxu0 }
 0x103   :  { %v419_v3 = vadd.f32 %v1492_v62, %v404_v63  ;;  %v405_v4 = vmul.f32 %v1251_v2, %v1487_v60  ;;  %v359_v5 = vpop.f32.mrb[3].mxu0 }
 0x104   :  { %v417_v6 = vadd.f32 %v1492_v62, %v402_v1  ;;  %v403_v7 = vmul.f32 %v1487_v60, %v359_v5 }
 0x105   :  { %v427_v8 = vmax.f32 %v419_v3, 0.0  ;;  %v420_v9 = vadd.f32 %v1492_v62, %v405_v4 }
 0x106   :  { %v425_v10 = vmax.f32 %v417_v6, 0.0  ;;  %v418_v11 = vadd.f32 %v1492_v62, %v403_v7  ;;  %v566_v7 = vld [vmem:[#allocation2 + $0x14] sm:$0xf] }
 0x107   :  { %v1178_v12 = vpack.c.bf16 %v427_v8, %v427_v8  ;;  %v428_v13 = vmax.f32 %v420_v9, 0.0 }
 0x108   :  { %v1176_v14 = vpack.c.bf16 %v425_v10, %v425_v10  ;;  %v426_v15 = vmax.f32 %v418_v11, 0.0  ;;  %v1254_v16 = vpop.f32.mrb[4].mxu0 }
 0x109   :  { %v490_v17 = vshrl.u32 %v1178_v12, 16  ;;  %v493_v18 = vshll.u32 %v1178_v12, 16  ;;  %v1179_v19 = vpack.c.bf16 %v428_v13, %v428_v13  ;;  %v408_v20 = vmul.f32 %v1254_v16, %v1487_v60  ;;  %v372_v21 = vpop.f32.mrb[5].mxu0 }
 0x10a   :  { %v473_v22 = vshrl.u32 %v1176_v14, 16  ;;  %v476_v23 = vshll.u32 %v1176_v14, 16  ;;  %v1177_v24 = vpack.c.bf16 %v426_v15, %v426_v15  ;;  %v406_v25 = vmul.f32 %v1487_v60, %v372_v21  ;;  %v1255_v26 = vpop.f32.mrb[6].mxu0 }
 0x10b   :  { %v492_v27 = vrot.slane %v490_v17, 7  ;;  %v499_v28 = vshrl.u32 %v1179_v19, 16  ;;  %v502_v29 = vshll.u32 %v1179_v19, 16  ;;  %v423_v30 = vadd.f32 %v1492_v62, %v408_v20  ;;  %v375_v31 = vpop.f32.mrb[7].mxu0 }
 0x10c   :  { %v475_v32 = vrot.slane %v473_v22, 7  ;;  %v481_v34 = vshrl.u32 %v1177_v24, 16  ;;  %v484_v35 = vshll.u32 %v1177_v24, 16  ;;  %v421_v36 = vadd.f32 %v1492_v62, %v406_v25 }
 0x10d   :  { %v495_v37 = vor.u32 %v493_v18, %v492_v27  ;;  %v497_v38 = vrot.slane %v492_v27, 4  ;;  %v501_v41 = vrot.slane %v499_v28, 7  ;;  %v431_v42 = vmax.f32 %v423_v30, 0.0  ;;  %v572_v30 = vld [vmem:[#allocation2 + $0x24] sm:$0x1] }
 0x10e   :  { %v478_v43 = vor.u32 %v476_v23, %v475_v32  ;;  %v479_v44 = vrot.slane %v475_v32, 4  ;;  %v483_v47 = vrot.slane %v481_v34, 7  ;;  %v429_v48 = vmax.f32 %v421_v36, 0.0 }
 0x10f   :  { %v504_v49 = vor.u32 %v502_v29, %v501_v41  ;;  %v506_v50 = vrot.slane %v501_v41, 4  ;;  %v1182_v51 = vpack.c.bf16 %v431_v42, %v431_v42  ;;  %v409_v52 = vmul.f32 %v1255_v26, %v1487_v60 }
 0x110   :  { %v556_v53 = vsel %vm1507_vm8, %v478_v43, %v555_v39  ;;  %v486_v54 = vor.u32 %v484_v35, %v483_v47  ;;  %v488_v55 = vrot.slane %v483_v47, 4  ;;  %v1180_v56 = vpack.c.bf16 %v429_v48, %v429_v48 }
 0x111   :  { %557 = vst [vmem:[#allocation2] sm:$0xf] %v556_v53  ;;  %v505_v57 = vsel %vm1514_vm9, %v497_v38, %v504_v49  ;;  %v564_v58 = vsel %vm1520_vm10, %v506_v50, %v563_v46  ;;  %v525_v61 = vshrl.u32 %v1182_v51, 16  ;;  %v424_v2 = vadd.f32 %v1492_v62, %v409_v52 }
 0x112   :  { %560 = vst.msk [vmem:[#allocation2 + $0xc] sm:$0xf] %vm433_vm3, %v505_v57  ;;  %565 = vst [vmem:[#allocation2 + $0x10] sm:$0x1] %v564_v58  ;;  %v487_v63 = vsel %vm1514_vm9, %v479_v44, %v486_v54  ;;  %v496_v0 = vsel %vm1514_vm9, %v488_v55, %v495_v37  ;;  %v508_v1 = vshrl.u32 %v1180_v56, 16  ;;  %v407_v3 = vmul.f32 %v1487_v60, %v375_v31 }
 0x113   :  { %558 = vst.msk [vmem:[#allocation2 + $0x4] sm:$0xf] %vm433_vm3, %v487_v63  ;;  %559 = vst.msk [vmem:[#allocation2 + $0x8] sm:$0xf] %vm433_vm3, %v496_v0  ;;  %v527_v4 = vrot.slane %v525_v61, 7  ;;  %v511_v6 = vshll.u32 %v1180_v56, 16 }
 0x114   :  { %v510_v5 = vrot.slane %v508_v1, 7  ;;  %v432_v8 = vmax.f32 %v424_v2, 0.0  ;;  %v422_v9 = vadd.f32 %v1492_v62, %v407_v3  ;;  %v528_v13 = vshll.u32 %v1182_v51, 16 }
 0x115   :  { %v532_v14 = vrot.slane %v527_v4, 4 }
 0x116   :  { %v513_v10 = vor.u32 %v511_v6, %v510_v5  ;;  %v1183_v11 = vpack.c.bf16 %v432_v8, %v432_v8  ;;  %v430_v12 = vmax.f32 %v422_v9, 0.0  ;;  %v514_v15 = vrot.slane %v510_v5, 4 }
 0x117   :  { %v530_v21 = vor.u32 %v528_v13, %v527_v4 }
 0x118   :  { %v567_v16 = vsel %vm1507_vm8, %v513_v10, %v566_v7  ;;  %v1543_v17 = vld [vmem:[#allocation2] sm:$0xf]  ;;  %v534_v60 = vshrl.u32 %v1183_v11, 16  ;;  %v537_v18 = vshll.u32 %v1183_v11, 16  ;;  %v1181_v19 = vpack.c.bf16 %v430_v12, %v430_v12 }
 0x119   :  { %568 = vst [vmem:[#allocation2 + $0x14] sm:$0xf] %v567_v16  ;;  %v1545_v20 = vld [vmem:[#allocation2 + $0xc] sm:$0xf]  ;;  %v593_v62 = vshrl.u32 %v1543_v17, 16  ;;  %v596_v24 = vshll.u32 %v1543_v17, 16 }
 0x11a   :  { %v1548_v22 = vld [vmem:[#allocation2 + $0x4] sm:$0xf]  ;;  %v1550_v23 = vld [vmem:[#allocation2 + $0x8] sm:$0xf]  ;;  %v622_v25 = vshll.u32 %v1545_v20, 16  ;;  %v536_v26 = vrot.slane %v534_v60, 7 }
 0x11b   :  { %v516_v27 = vshrl.u32 %v1181_v19, 16  ;;  %v519_v28 = vshll.u32 %v1181_v19, 16  ;;  %v595_v29 = vrot.slane %v593_v62, 4  ;;  %v598_v31 = vrot.slane %v596_v24, 5  ;;  %v1563_v52 = vld [vmem:[#allocation2 + $0x10] sm:$0x1] }
 0x11c   :  { %v602_v32 = vshll.u32 %v1548_v22, 16  ;;  %v606_v33 = vshrl.u32 %v1548_v22, 16  ;;  %v612_v34 = vshll.u32 %v1550_v23, 16  ;;  %v539_v35 = vor.u32 %v537_v18, %v536_v26 }
 0x11d   :  { %v541_v36 = vrot.slane %v536_v26, 4  ;;  %v518_v37 = vrot.slane %v516_v27, 7  ;;  %v616_v38 = vshrl.u32 %v1550_v23, 16  ;;  %v599_v39 = vor.u32 %v598_v31, %v595_v29  ;;  %v1335_v26 = vld [vmem:[%s1738_s4 + $0x8] sm:$0xff]  }
 0x11e   :  { %v604_v41 = vrot.slane %v602_v32, 5  ;;  %v608_v42 = vrot.slane %v606_v33, 4  ;;  %v614_v43 = vrot.slane %v612_v34, 5  ;;  %v540_v44 = vsel %vm1514_vm9, %v532_v14, %v539_v35 }
 0x11f   :  { %v573_v46 = vsel %vm1520_vm10, %v541_v36, %v572_v30  ;;  %v521_v47 = vor.u32 %v519_v28, %v518_v37  ;;  %v523_v48 = vrot.slane %v518_v37, 4  ;;  %571 = vst.msk [vmem:[#allocation2 + $0x20] sm:$0xf] %vm433_vm3, %v540_v44  ;;  %v600_v49 = vrot.slane %v599_v39, 4 }
 0x120   :  { %574 = vst [vmem:[#allocation2 + $0x24] sm:$0x1] %v573_v46  ;;  %v609_v50 = vor.u32 %v608_v42, %v604_v41  ;;  %v618_v51 = vrot.slane %v616_v38, 4  ;;  %v1565_v53 = vld [vmem:[#allocation2 + $0x14] sm:$0xf]  ;;  %v624_v56 = vrot.slane %v622_v25, 5 }
 0x121   :  { %v522_v54 = vsel %vm1514_vm9, %v514_v15, %v521_v47  ;;  %v531_v55 = vsel %vm1514_vm9, %v523_v48, %v530_v21  ;;  %v626_v57 = vshrl.u32 %v1545_v20, 16  ;;  %v632_v0 = vshll.u32 %v1563_v52, 16  ;;  %v1337_v38 = vld [vmem:[%s1738_s4 + $0x20] sm:$0xff]  }
 0x122   :  { %569 = vst.msk [vmem:[#allocation2 + $0x18] sm:$0xf] %vm433_vm3, %v522_v54  ;;  %570 = vst.msk [vmem:[#allocation2 + $0x1c] sm:$0xf] %vm433_vm3, %v531_v55  ;;  %v610_v58 = vrot.slane %v609_v50, 4  ;;  %v619_v61 = vor.u32 %v618_v51, %v614_v43  ;;  %v637_v40 = vshrl.u32 %v1565_v53, 16  ;;  %v605_v2 = vsel %vm1573_vm13, %v600_v49, %v604_v41 }
 0x123   :  { %v628_v63 = vrot.slane %v626_v57, 4  ;;  %v640_v1 = vshll.u32 %v1565_v53, 16  ;;  %v634_v11 = vrot.slane %v632_v0, 5  ;;  %v1148_v51 = vcombine.low %v1543_v17, %v1548_v22 }
 0x124   :  { %v615_v3 = vsel %vm1573_vm13, %v610_v58, %v614_v43  ;;  %v620_v4 = vrot.slane %v619_v61, 4  ;;  %v639_v7 = vrot.slane %v637_v40, 4  ;;  %v902_v54 = vrot.slane %v1548_v22, 5  ;;  %v50_v58 = vld [vmem:[%s1737_s0 + $0x41] sm:$0xff] }
 0x125   :  { %v1138_v5 = vcombine.low %v605_v2, %v615_v3  ;;  %v629_v6 = vor.u32 %v628_v63, %v624_v56  ;;  %v642_v8 = vrot.slane %v640_v1, 5  ;;  %v1149_v55 = vcombine.low %v1550_v23, %v1545_v20 }
 0x126   :  { %v625_v9 = vsel %vm1573_vm13, %v620_v4, %v624_v56  ;;  %v1590_v12 = vld [vmem:[#allocation2 + $0x20] sm:$0xf]  ;;  %v904_v57 = vrot.slane %v902_v54, 4  ;;  %v905_v22 = vrot.slane %v1550_v23, 5  ;;  %v908_v61 = vrot.slane %v1545_v20, 5 }
 0x127   :  { %1260 = vmatprep.mubr.msk.bf16.mxu1 %vm130_vm1, %v1138_v5  ;;  %v630_v10 = vrot.slane %v629_v6, 4  ;;  %v1592_v13 = vld [vmem:[#allocation2 + $0x24] sm:$0x1]  ;;  %v666_v14 = vshll.u32 %v1590_v12, 16  ;;  %v670_v15 = vshrl.u32 %v1590_v12, 16  ;;  %v643_v19 = vor.u32 %v642_v8, %v639_v7 }
 0x128   :  { %v676_v30 = vshll.u32 %v1592_v13, 16  ;;  %v1158_v63 = vrot.slane %v1543_v17, 9  ;;  %v906_v0 = vsel %vm1639_vm0, %v904_v57, %v905_v22  ;;  %v907_v2 = vrot.slane %v905_v22, 4 }
 0x129   :  { %v635_v16 = vsel %vm1573_vm13, %v630_v10, %v634_v11  ;;  %v1598_v60 = vld [vmem:[#allocation2 + $0x18] sm:$0xf]  ;;  %v1600_v18 = vld [vmem:[#allocation2 + $0x1c] sm:$0xf]  ;;  %v668_v28 = vrot.slane %v666_v14, 5  ;;  %v672_v29 = vrot.slane %v670_v15, 4 }
 0x12a   :  { %v1139_v62 = vcombine.low %v625_v9, %v635_v16  ;;  %v646_v21 = vshll.u32 %v1598_v60, 16  ;;  %v650_v24 = vshrl.u32 %v1598_v60, 16  ;;  %v656_v25 = vshll.u32 %v1600_v18, 16 }
 0x12b   :  { %v660_v27 = vshrl.u32 %v1600_v18, 16  ;;  %v673_v35 = vor.u32 %v672_v29, %v668_v28  ;;  %v644_v36 = vrot.slane %v643_v19, 4  ;;  %v678_v42 = vrot.slane %v676_v30, 5  ;;  %v1174_v19 = vld [vmem:[%s1741_s5] ss:$0 sm:$0xff]  ;;  %v43_v29 = vld [vmem:[%s1737_s0 + $0x1] sm:$0xff] }
 0x12c   :  { %1261 = vmatmul.mubr.msk.bf16.vlgmr.msra.gmra.mrb[0].mxu1 %vm130_vm1, %v1139_v62  ;;  %v648_v31 = vrot.slane %v646_v21, 5  ;;  %v652_v32 = vrot.slane %v650_v24, 4  ;;  %v658_v33 = vrot.slane %v656_v25, 5  ;;  %v1150_v56 = vcombine.low %v1565_v53, %v1598_v60  ;;  %v1175_v21 = vld [vmem:[%s1742_s6] ss:$0 sm:$0xff]  ;;  %v45_v25 = vld [vmem:[%s1737_s0 + $0x11] sm:$0xff] }
 0x12d   :  { %1269 = vmatpush3.bf16.msra.mxu1 %v1481_v59  ;;  %v662_v34 = vrot.slane %v660_v27, 4  ;;  %v674_v41 = vrot.slane %v673_v35, 4  ;;  %v915_v40 = vrot.slane %v1598_v60, 5  ;;  %v1151_v1 = vcombine.low %v1600_v18, %v1590_v12 }
 0x12e   :  { %v653_v37 = vor.u32 %v652_v32, %v648_v31  ;;  %1270 = vmatprep.subr.bf16.mxu1 %v1335_v26  ;;  %v649_v59 = vsel %vm1573_vm13, %v644_v36, %v648_v31  ;;  %v903_v23 = vsel %vm1639_vm0, %v1158_v63, %v902_v54  ;;  %v910_v4 = vrot.slane %v908_v61, 4 }
 0x12f   :  { %v663_v39 = vor.u32 %v662_v34, %v658_v33  ;;  %v679_v46 = vsel %vm1573_vm13, %v674_v41, %v678_v42  ;;  %v1164_v3 = vcombine.low %v903_v23, %v906_v0  ;;  %v917_v20 = vrot.slane %v915_v40, 4 }
 0x130   :  { %v654_v43 = vrot.slane %v653_v37, 4  ;;  %v911_v17 = vrot.slane %v1563_v52, 5  ;;  %v918_v5 = vrot.slane %v1600_v18, 5  ;;  %v909_v6 = vsel %vm1639_vm0, %v907_v2, %v908_v61  ;;  %v44_v37 = vld [vmem:[%s1737_s0 + $0x9] sm:$0xff] }
 0x131   :  { %v664_v44 = vrot.slane %v663_v39, 4  ;;  %1271 = vmatpush3.bf16.msra.mxu1 %v1335_v26  ;;  %v921_v8 = vrot.slane %v1590_v12, 5  ;;  %v1159_v9 = vrot.slane %v1565_v53, 9  ;;  %v924_v60 = vrot.slane %v1592_v13, 5 }
 0x132   :  { %v659_v47 = vsel %vm1573_vm13, %v654_v43, %v658_v33  ;;  %1280 = vmatprep.subr.bf16.mxu1 %v1337_v38  ;;  %v912_v7 = vsel %vm1639_vm0, %v910_v4, %v911_v17  ;;  %v919_v10 = vsel %vm1639_vm0, %v917_v20, %v918_v5  ;;  %v920_v15 = vrot.slane %v918_v5, 4  ;;  %v46_v33 = vld [vmem:[%s1737_s0 + $0x19] sm:$0xff] }
 0x133   :  { %v1140_v48 = vcombine.low %v649_v59, %v659_v47  ;;  %v669_v49 = vsel %vm1573_vm13, %v664_v44, %v668_v28  ;;  %v1165_v11 = vcombine.low %v909_v6, %v912_v7  ;;  %v916_v52 = vsel %vm1639_vm0, %v1159_v9, %v915_v40  ;;  %v48_v40 = vld [vmem:[%s1737_s0 + $0x31] sm:$0xff] }
 0x134   :  { %v1141_v50 = vcombine.low %v669_v49, %v679_v46  ;;  %v1166_v14 = vcombine.low %v916_v52, %v919_v10  ;;  %v923_v16 = vrot.slane %v921_v8, 4  ;;  %v922_v12 = vsel %vm1639_vm0, %v920_v15, %v921_v8 }
 0x135   :  { %1264 = vmatprep.mubr.msk.bf16.mxu1 %vm130_vm1, %v1140_v48 }
 0x136   :  { %1265 = vmatmul.mubr.msk.bf16.gmra.mrb[4].mxu1 %vm130_vm1, %v1141_v50  ;;  %v925_v53 = vsel %vm1639_vm0, %v923_v16, %v924_v60  ;;  %v49_v50 = vld [vmem:[%s1737_s0 + $0x39] sm:$0xff] }
 0x137   :  { %1272 = vmatprep.mubr.msk.bf16.mxu1 %vm130_vm1, %v1148_v51  ;;  %v1167_v18 = vcombine.low %v922_v12, %v925_v53 }
 0x13e   :  { %1273 = vmatmul.mubr.msk.bf16.vlgmr.msra.gmra.mrb[0].mxu1 %vm130_vm1, %v1149_v55 }
 0x13f   :  { %1276 = vmatprep.mubr.msk.bf16.mxu1 %vm130_vm1, %v1150_v56  ;;  %1281 = vmatpush3.bf16.msra.mxu1 %v1337_v38 }
 0x140   :  { %1282 = vmatprep.subr.bf16.mxu1 %v1340_v45 }
 0x143   :  { %1283 = vmatpush3.bf16.msra.mxu1 %v1340_v45  ;;  %v47_v45 = vld [vmem:[%s1737_s0 + $0x29] sm:$0xff] }
 0x146   :  { %1277 = vmatmul.mubr.msk.bf16.gmra.mrb[4].mxu1 %vm130_vm1, %v1151_v1 }
 0x147   :  { %1284 = vmatprep.mubr.msk.bf16.mxu1 %vm130_vm1, %v1164_v3 }
 0x14e   :  { %1285 = vmatmul.mubr.msk.bf16.vlgmr.msra.gmra.mrb[0].mxu1 %vm130_vm1, %v1165_v11 }
 0x14f   :  { %1288 = vmatprep.mubr.msk.bf16.mxu1 %vm130_vm1, %v1166_v14 }
 0x156   :  { %1289 = vmatmul.mubr.msk.bf16.gmra.mrb[4].mxu1 %vm130_vm1, %v1167_v18 }
 0x221   :  { %v1286_v62 = vpop.f32.mrb[0].mxu1 }
 0x222   :  { %v1049_v24 = vmul.f32 %v1286_v62, %v1174_v19  ;;  %v1001_v13 = vpop.f32.mrb[1].mxu1 }
 0x223   :  { %v1047_v26 = vmul.f32 %v1174_v19, %v1001_v13  ;;  %v1287_v27 = vpop.f32.mrb[2].mxu1 }
 0x224   :  { %v1064_v28 = vadd.f32 %v1175_v21, %v1049_v24  ;;  %v1050_v30 = vmul.f32 %v1287_v27, %v1174_v19  ;;  %v1004_v31 = vpop.f32.mrb[3].mxu1 }
 0x225   :  { %v1062_v32 = vadd.f32 %v1175_v21, %v1047_v26  ;;  %v1048_v34 = vmul.f32 %v1174_v19, %v1004_v31 }
 0x226   :  { %v1072_v35 = vadd.f32 %v1064_v28, %v45_v25  ;;  %v1065_v36 = vadd.f32 %v1175_v21, %v1050_v30 }
 0x227   :  { %v1070_v38 = vadd.f32 %v1062_v32, %v43_v29  ;;  %v1063_v39 = vadd.f32 %v1175_v21, %v1048_v34 }
 0x228   :  { %v1080_v41 = vmax.f32 %v1072_v35, 0.0  ;;  %v1073_v42 = vadd.f32 %v1065_v36, %v46_v33 }
 0x229   :  { %v1078_v43 = vmax.f32 %v1070_v38, 0.0  ;;  %v1071_v44 = vadd.f32 %v1063_v39, %v44_v37  ;;  %v1290_v46 = vpop.f32.mrb[4].mxu1 }
 0x22a   :  { %1088 = vst.msk [vmem:[%s1743_s7 + $0x10] sm:$0xff] %vm130_vm1, %v1080_v41  ;;  %v1081_v59 = vmax.f32 %v1073_v42, 0.0  ;;  %v1053_v47 = vmul.f32 %v1290_v46, %v1174_v19  ;;  %v1017_v48 = vpop.f32.mrb[5].mxu1 }
 0x22b   :  { %1086 = vst.msk [vmem:[%s1743_s7] sm:$0xff] %vm130_vm1, %v1078_v43  ;;  %v1079_v49 = vmax.f32 %v1071_v44, 0.0  ;;  %v1051_v51 = vmul.f32 %v1174_v19, %v1017_v48  ;;  %v1291_v54 = vpop.f32.mrb[6].mxu1 }
 0x22c   :  { %1089 = vst.msk [vmem:[%s1743_s7 + $0x18] sm:$0xff] %vm130_vm1, %v1081_v59  ;;  %v1068_v55 = vadd.f32 %v1175_v21, %v1053_v47  ;;  %v1054_v56 = vmul.f32 %v1291_v54, %v1174_v19  ;;  %v1020_v57 = vpop.f32.mrb[7].mxu1 }
 0x22d   :  { %1087 = vst.msk [vmem:[%s1743_s7 + $0x8] sm:$0xff] %vm130_vm1, %v1079_v49  ;;  %v1066_v22 = vadd.f32 %v1175_v21, %v1051_v51  ;;  %v1052_v61 = vmul.f32 %v1174_v19, %v1020_v57 }
 0x22e   :  { %v1076_v63 = vadd.f32 %v1068_v55, %v49_v50  ;;  %v1069_v0 = vadd.f32 %v1175_v21, %v1054_v56 }
 0x22f   :  { %v1074_v1 = vadd.f32 %v1066_v22, %v47_v45  ;;  %v1067_v23 = vadd.f32 %v1175_v21, %v1052_v61 }
 0x230   :  { %v1084_v2 = vmax.f32 %v1076_v63, 0.0  ;;  %v1077_v3 = vadd.f32 %v1069_v0, %v50_v58 }
 0x231   :  { %v1082_v4 = vmax.f32 %v1074_v1, 0.0  ;;  %v1075_v20 = vadd.f32 %v1067_v23, %v48_v40 }
 0x232   :  { %1092 = vst.msk [vmem:[%s1743_s7 + $0x30] sm:$0xff] %vm130_vm1, %v1084_v2  ;;  %v1085_v17 = vmax.f32 %v1077_v3, 0.0 }
 0x233   :  { %1090 = vst.msk [vmem:[%s1743_s7 + $0x20] sm:$0xff] %vm130_vm1, %v1082_v4  ;;  %v1083_v5 = vmax.f32 %v1075_v20, 0.0 }
 0x234   :  { %1093 = vst.msk [vmem:[%s1743_s7 + $0x38] sm:$0xff] %vm130_vm1, %v1085_v17 }
 0x235   :  { %1091 = vst.msk [vmem:[%s1743_s7 + $0x28] sm:$0xff] %vm130_vm1, %v1083_v5 }

</bundles_post_ra>
